<compile_context>
chip_gen: v7x
topology: tpu7x:2x2x1
jax: 0.10.0
libtpu: 0.0.40
codegen_flags: <defaults>
</compile_context>

<pallas_src>
import jax
import jax.numpy as jnp
from jax.experimental import pallas as pl
from jax.experimental.pallas import tpu as pltpu

LANE = 128


def _round_up(v, m):
    return (v + m - 1) // m * m


def nbeats_block_kernel(x_ref, w0_ref, b0_ref, wh_ref, bh_ref, out_ref):
    # x_ref  : (B, N*T)          per-series backcast windows concatenated along lanes
    # w0_ref : (N*T, NUp)        block-diagonal first-layer weight, pre-transposed, lane-padded
    # b0_ref : (1, NUp)          first-layer biases, lane-padded with zeros
    # wh_ref : (L, NUp, NUp)     block-diagonal hidden weights, pre-transposed, padded
    # bh_ref : (L, 1, NUp)       hidden biases, padded
    # out_ref: (B, NUp)          lane-dense output slab (padded cols are exactly 0)
    h = jnp.dot(x_ref[...], w0_ref[...], preferred_element_type=jnp.float32)
    h = jnp.maximum(h + b0_ref[...], 0.0)                        # ReLU
    # TODO(synk): Dropout(p=0.1) is stochastic in training mode; eval-mode identity here.
    for l in range(wh_ref.shape[0]):                             # static unroll (L small)
        h = jnp.dot(h, wh_ref[l], preferred_element_type=jnp.float32)
        h = jnp.maximum(h + bh_ref[l], 0.0)
    out_ref[...] = h.astype(out_ref.dtype)


def _pack_first_layer(w0, nu_pad):
    # w0: (N, U, T) -- PyTorch Linear(T, U).weight layout (out, in) per series.
    # Returns block-diagonal, pre-transposed (N*T, nu_pad) so x_flat @ W == per-series x @ w.T.
    N, U, T = w0.shape
    eye = jnp.eye(N, dtype=w0.dtype)
    wt = jnp.transpose(w0, (0, 2, 1))                            # (N, T, U)
    bd = jnp.einsum("nio,nm->nimo", wt, eye).reshape(N * T, N * U)
    return jnp.pad(bd, ((0, 0), (0, nu_pad - N * U)))


def _pack_hidden_layers(wh, nu_pad):
    # wh: (N, L, U, U) -- PyTorch Linear(U, U).weight layout per series / layer.
    # Returns (L, nu_pad, nu_pad) block-diagonal, pre-transposed, zero-padded.
    N, L, U, _ = wh.shape
    eye = jnp.eye(N, dtype=wh.dtype)
    wt = jnp.transpose(wh, (1, 0, 3, 2))                         # (L, N, U_in, U_out)
    bd = jnp.einsum("lnio,nm->lnimo", wt, eye).reshape(L, N * U, N * U)
    pad = nu_pad - N * U
    return jnp.pad(bd, ((0, 0), (0, pad), (0, pad)))


@jax.jit
def nbeats_block_forward(x, w0, b0, wh, bh):
    """x: (B, T, N) float32; weights in PyTorch layout. Returns (B, U, N)."""
    B, T, N = x.shape
    U = w0.shape[1]
    L = wh.shape[1]
    NT, NU = N * T, N * U
    NUp = _round_up(NU, LANE)

    # Layout plumbing (outside the kernel; fuses under jit, negligible vs kernel):
    x_flat = jnp.transpose(x, (0, 2, 1)).reshape(B, NT)          # col n*T + t = x[:, t, n]
    w0_bd = _pack_first_layer(w0, NUp)                           # (NT, NUp)
    b0_flat = jnp.pad(b0.reshape(1, NU), ((0, 0), (0, NUp - NU)))
    wh_bd = _pack_hidden_layers(wh, NUp)                         # (L, NUp, NUp)
    bh_flat = jnp.pad(jnp.transpose(bh, (1, 0, 2)).reshape(L, 1, NU),
                      ((0, 0), (0, 0), (0, NUp - NU)))           # (L, 1, NUp)

    out_flat = pl.pallas_call(
        nbeats_block_kernel,
        out_shape=jax.ShapeDtypeStruct((B, NUp), jnp.float32),
        grid=(1,),                                               # single invocation
        in_specs=[
            pl.BlockSpec((B, NT), lambda i: (0, 0)),             # x (full block)
            pl.BlockSpec((NT, NUp), lambda i: (0, 0)),           # W0 block-diag
            pl.BlockSpec((1, NUp), lambda i: (0, 0)),            # b0
            pl.BlockSpec((L, NUp, NUp), lambda i: (0, 0, 0)),    # hidden W block-diag
            pl.BlockSpec((L, 1, NUp), lambda i: (0, 0, 0)),      # hidden b
        ],
        out_specs=pl.BlockSpec((B, NUp), lambda i: (0, 0)),
        compiler_params=pltpu.CompilerParams(
            dimension_semantics=("arbitrary",)),
    )(x_flat, w0_bd, b0_flat, wh_bd, bh_flat)

    # drop lane padding, then (B, N*U) -> (B, N, U) -> (B, U, N) == torch.stack(..., dim=2)
    return jnp.transpose(out_flat[:, :NU].reshape(B, N, U), (0, 2, 1))


def reference_forward(x, w0, b0, wh, bh):
    """Plain-JAX reference mirroring the PyTorch module (eval mode)."""
    outs = []
    N = x.shape[-1]
    for n in range(N):
        h = jnp.maximum(x[..., n] @ w0[n].T + b0[n], 0.0)
        for l in range(wh.shape[1]):
            h = jnp.maximum(h @ wh[n, l].T + bh[n, l], 0.0)
        outs.append(h)
    return jnp.stack(outs, axis=2)                               # (B, U, N)


def init_params(key, N, T, U, L):
    """Deterministic synthetic weights with PyTorch Linear shape conventions."""
    k0, k1, k2, k3 = jax.random.split(key, 4)
    w0 = 0.1 * jax.random.normal(k0, (N, U, T), jnp.float32)     # Linear(T, U).weight
    b0 = 0.1 * jax.random.normal(k1, (N, U), jnp.float32)        # Linear(T, U).bias
    wh = 0.1 * jax.random.normal(k2, (N, L, U, U), jnp.float32)  # Linear(U, U).weight
    bh = 0.1 * jax.random.normal(k3, (N, L, U), jnp.float32)     # Linear(U, U).bias
    return w0, b0, wh, bh


if __name__ == "__main__":
    # Module hyper-params (small, consistent with NBEATSBlock defaults)
    backcast_length = 10
    units = 32
    num_block_layers = 4
    tar_num, cov_num = 2, 1
    N = tar_num + cov_num
    L = num_block_layers - 1
    batch = 8

    key = jax.random.PRNGKey(0)
    kx, kp = jax.random.split(key)
    x = jax.random.normal(kx, (batch, backcast_length, N), jnp.float32)
    w0, b0, wh, bh = init_params(kp, N, backcast_length, units, L)

    out = nbeats_block_forward(x, w0, b0, wh, bh)
    out = jax.block_until_ready(out)

    ref = reference_forward(x, w0, b0, wh, bh)
    assert out.shape == (batch, units, N), out.shape
    assert jnp.allclose(out, ref, atol=1e-5, rtol=1e-5), "mismatch vs reference"

    print("KERNEL_OK")
</pallas_src>

<mosaic_0001>
module attributes {stable_mosaic.version = 11 : i64} {
  func.func @nbeats_block_kernel(%arg0: i32, %arg1: memref<8x30xf32, #tpu.memory_space<vmem>>, %arg2: memref<30x128xf32, #tpu.memory_space<vmem>>, %arg3: memref<1x128xf32, #tpu.memory_space<vmem>>, %arg4: memref<3x128x128xf32, #tpu.memory_space<vmem>>, %arg5: memref<3x1x128xf32, #tpu.memory_space<vmem>>, %arg6: memref<8x128xf32, #tpu.memory_space<vmem>>) attributes {dimension_semantics = [#tpu.dimension_semantics<arbitrary>], iteration_bounds = array<i64: 1>, scalar_prefetch = 0 : i64, scratch_operands = 0 : i64, tpu.core_type = #tpu.core_type<tc>, window_params = [{pipeline_mode = #tpu.pipeline_mode<synchronous>, transform_indices = @transform_0, window_bounds = array<i64: 8, 30>}, {pipeline_mode = #tpu.pipeline_mode<synchronous>, transform_indices = @transform_1, window_bounds = array<i64: 30, 128>}, {pipeline_mode = #tpu.pipeline_mode<synchronous>, transform_indices = @transform_2, window_bounds = array<i64: 1, 128>}, {pipeline_mode = #tpu.pipeline_mode<synchronous>, transform_indices = @transform_3, window_bounds = array<i64: 3, 128, 128>}, {pipeline_mode = #tpu.pipeline_mode<synchronous>, transform_indices = @transform_4, window_bounds = array<i64: 3, 1, 128>}, {pipeline_mode = #tpu.pipeline_mode<synchronous>, transform_indices = @transform_5, window_bounds = array<i64: 8, 128>}]} {
    %c0 = arith.constant 0 : index
    %c0_0 = arith.constant 0 : index
    %0 = vector.load %arg1[%c0, %c0_0] : memref<8x30xf32, #tpu.memory_space<vmem>>, vector<8x30xf32>
    %c0_1 = arith.constant 0 : index
    %c0_2 = arith.constant 0 : index
    %1 = vector.load %arg2[%c0_1, %c0_2] : memref<30x128xf32, #tpu.memory_space<vmem>>, vector<30x128xf32>
    %cst = arith.constant dense<0.000000e+00> : vector<8x128xf32>
    %2 = tpu.matmul %0, %1, %cst {dimension_numbers = #tpu.dot_dimension_numbers<[1], [0], [0], [1], [0, 0, 1, 1], [], []>} : vector<8x30xf32>, vector<30x128xf32>, vector<8x128xf32> -> vector<8x128xf32>
    %c0_3 = arith.constant 0 : index
    %c0_4 = arith.constant 0 : index
    %3 = vector.load %arg3[%c0_3, %c0_4] : memref<1x128xf32, #tpu.memory_space<vmem>>, vector<1x128xf32>
    %4 = vector.broadcast %3 : vector<1x128xf32> to vector<8x128xf32>
    %5 = arith.addf %2, %4 : vector<8x128xf32>
    %cst_5 = arith.constant 0.000000e+00 : f32
    %6 = vector.broadcast %cst_5 : f32 to vector<8x128xf32>
    %7 = arith.maximumf %5, %6 : vector<8x128xf32>
    %c0_6 = arith.constant 0 : index
    %c0_7 = arith.constant 0 : index
    %c0_8 = arith.constant 0 : index
    %8 = vector.load %arg4[%c0_6, %c0_7, %c0_8] : memref<3x128x128xf32, #tpu.memory_space<vmem>>, vector<1x128x128xf32>
    %9 = vector.shape_cast %8 : vector<1x128x128xf32> to vector<128x128xf32>
    %cst_9 = arith.constant dense<0.000000e+00> : vector<8x128xf32>
    %10 = tpu.matmul %7, %9, %cst_9 {dimension_numbers = #tpu.dot_dimension_numbers<[1], [0], [0], [1], [0, 0, 1, 1], [], []>} : vector<8x128xf32>, vector<128x128xf32>, vector<8x128xf32> -> vector<8x128xf32>
    %c0_10 = arith.constant 0 : index
    %c0_11 = arith.constant 0 : index
    %c0_12 = arith.constant 0 : index
    %11 = vector.load %arg5[%c0_10, %c0_11, %c0_12] : memref<3x1x128xf32, #tpu.memory_space<vmem>>, vector<1x1x128xf32>
    %12 = vector.shape_cast %11 : vector<1x1x128xf32> to vector<1x128xf32>
    %13 = vector.broadcast %12 : vector<1x128xf32> to vector<8x128xf32>
    %14 = arith.addf %10, %13 : vector<8x128xf32>
    %cst_13 = arith.constant 0.000000e+00 : f32
    %15 = vector.broadcast %cst_13 : f32 to vector<8x128xf32>
    %16 = arith.maximumf %14, %15 : vector<8x128xf32>
    %c1 = arith.constant 1 : index
    %c0_14 = arith.constant 0 : index
    %c0_15 = arith.constant 0 : index
    %17 = vector.load %arg4[%c1, %c0_14, %c0_15] : memref<3x128x128xf32, #tpu.memory_space<vmem>>, vector<1x128x128xf32>
    %18 = vector.shape_cast %17 : vector<1x128x128xf32> to vector<128x128xf32>
    %cst_16 = arith.constant dense<0.000000e+00> : vector<8x128xf32>
    %19 = tpu.matmul %16, %18, %cst_16 {dimension_numbers = #tpu.dot_dimension_numbers<[1], [0], [0], [1], [0, 0, 1, 1], [], []>} : vector<8x128xf32>, vector<128x128xf32>, vector<8x128xf32> -> vector<8x128xf32>
    %c1_17 = arith.constant 1 : index
    %c0_18 = arith.constant 0 : index
    %c0_19 = arith.constant 0 : index
    %20 = vector.load %arg5[%c1_17, %c0_18, %c0_19] : memref<3x1x128xf32, #tpu.memory_space<vmem>>, vector<1x1x128xf32>
    %21 = vector.shape_cast %20 : vector<1x1x128xf32> to vector<1x128xf32>
    %22 = vector.broadcast %21 : vector<1x128xf32> to vector<8x128xf32>
    %23 = arith.addf %19, %22 : vector<8x128xf32>
    %cst_20 = arith.constant 0.000000e+00 : f32
    %24 = vector.broadcast %cst_20 : f32 to vector<8x128xf32>
    %25 = arith.maximumf %23, %24 : vector<8x128xf32>
    %c2 = arith.constant 2 : index
    %c0_21 = arith.constant 0 : index
    %c0_22 = arith.constant 0 : index
    %26 = vector.load %arg4[%c2, %c0_21, %c0_22] : memref<3x128x128xf32, #tpu.memory_space<vmem>>, vector<1x128x128xf32>
    %27 = vector.shape_cast %26 : vector<1x128x128xf32> to vector<128x128xf32>
    %cst_23 = arith.constant dense<0.000000e+00> : vector<8x128xf32>
    %28 = tpu.matmul %25, %27, %cst_23 {dimension_numbers = #tpu.dot_dimension_numbers<[1], [0], [0], [1], [0, 0, 1, 1], [], []>} : vector<8x128xf32>, vector<128x128xf32>, vector<8x128xf32> -> vector<8x128xf32>
    %c2_24 = arith.constant 2 : index
    %c0_25 = arith.constant 0 : index
    %c0_26 = arith.constant 0 : index
    %29 = vector.load %arg5[%c2_24, %c0_25, %c0_26] : memref<3x1x128xf32, #tpu.memory_space<vmem>>, vector<1x1x128xf32>
    %30 = vector.shape_cast %29 : vector<1x1x128xf32> to vector<1x128xf32>
    %31 = vector.broadcast %30 : vector<1x128xf32> to vector<8x128xf32>
    %32 = arith.addf %28, %31 : vector<8x128xf32>
    %cst_27 = arith.constant 0.000000e+00 : f32
    %33 = vector.broadcast %cst_27 : f32 to vector<8x128xf32>
    %34 = arith.maximumf %32, %33 : vector<8x128xf32>
    %c0_28 = arith.constant 0 : index
    %c0_29 = arith.constant 0 : index
    %35 = vector.load %arg6[%c0_28, %c0_29] : memref<8x128xf32, #tpu.memory_space<vmem>>, vector<8x128xf32>
    tpu.vector_store %arg6[%c0_28, %c0_29], %34 {strides = array<i32>} : memref<8x128xf32, #tpu.memory_space<vmem>>, vector<8x128xf32>,
    return
  }
  func.func @transform_0(%arg0: i32) -> (i32, i32) {
    %c0_i32 = arith.constant 0 : i32
    %c0_i32_0 = arith.constant 0 : i32
    %c0_i32_1 = arith.constant 0 : i32
    return %c0_i32, %c0_i32_0 : i32, i32
  }
  func.func @transform_1(%arg0: i32) -> (i32, i32) {
    %c0_i32 = arith.constant 0 : i32
    %c0_i32_0 = arith.constant 0 : i32
    %c0_i32_1 = arith.constant 0 : i32
    return %c0_i32, %c0_i32_0 : i32, i32
  }
  func.func @transform_2(%arg0: i32) -> (i32, i32) {
    %c0_i32 = arith.constant 0 : i32
    %c0_i32_0 = arith.constant 0 : i32
    %c0_i32_1 = arith.constant 0 : i32
    return %c0_i32, %c0_i32_0 : i32, i32
  }
  func.func @transform_3(%arg0: i32) -> (i32, i32, i32) {
    %c0_i32 = arith.constant 0 : i32
    %c0_i32_0 = arith.constant 0 : i32
    %c0_i32_1 = arith.constant 0 : i32
    %c0_i32_2 = arith.constant 0 : i32
    return %c0_i32, %c0_i32_0, %c0_i32_1 : i32, i32, i32
  }
  func.func @transform_4(%arg0: i32) -> (i32, i32, i32) {
    %c0_i32 = arith.constant 0 : i32
    %c0_i32_0 = arith.constant 0 : i32
    %c0_i32_1 = arith.constant 0 : i32
    %c0_i32_2 = arith.constant 0 : i32
    return %c0_i32, %c0_i32_0, %c0_i32_1 : i32, i32, i32
  }
  func.func @transform_5(%arg0: i32) -> (i32, i32) {
    %c0_i32 = arith.constant 0 : i32
    %c0_i32_0 = arith.constant 0 : i32
    %c0_i32_1 = arith.constant 0 : i32
    return %c0_i32, %c0_i32_0 : i32, i32
  }
}

</mosaic_0001>

<bundles_post_ra>
// kernel: nbeats_block_forward.1
= control target key start
LH: loop header
LB: loop body
LE: loop exit
PB: predicated region body
PF: predicated region fallthrough
CT: control target
= control target key end

     0   :  { %v697_v0 = vmov 0.0|0.0   ;;  %vm36_vm0 = vcmask 1045504   ;;  %vm698_vm1 = vmmov 0   ;;  %v699_v6 = vmov 0.0   ;;  %s939_s1 = inlined_call_operand.vmem [shape: f32[30,128], index: 1, kind: input, shape index: {}]   ;;  %s940_s3 = inlined_call_operand.vmem [shape: f32[3,128,128], index: 3, kind: input, shape index: {}]   ;;  %s941_s0 = inlined_call_operand.vmem [shape: f32[8,30], index: 0, kind: input, shape index: {}]   ;;  %s942_s2 = inlined_call_operand.vmem [shape: f32[1,128], index: 2, kind: input, shape index: {}]   ;;  %s943_s4 = inlined_call_operand.vmem [shape: f32[3,1,128], index: 4, kind: input, shape index: {}]   ;;  %s944_s5 = inlined_call_operand.vmem [shape: f32[8,128], index: 5, kind: output, shape index: {}]  }
   0x1   :  { %614 = vmatprep.subr.bf16.mxu0 %v697_v0  ;;  %v21_v1 = vld [vmem:[%s939_s1] sm:$0xff]  ;;  %v22_v2 = vld [vmem:[%s939_s1 + $0x8] sm:$0xff]  ;;  %v23_v3 = vld [vmem:[%s939_s1 + $0x10] sm:$0xff]  ;;  %621 = vmatprep.subr.bf16.mxu1 %v697_v0  ;;  %vm700_vm2 = vmmov 1   ;;  %vm32_vm4 = vcmask 244736  }
   0x2   :  { %v615_v4 = vpack.c.bf16 %v22_v2, %v21_v1  ;;  %v24_v5 = vld [vmem:[%s939_s1 + $0x18] sm:$0x3f]  ;;  %506 = vmatprep.mubr.msk.f32.mxu0 %vm698_vm1, %v699_v6  ;;  %541 = vmatprep.mubr.msk.f32.mxu1 %vm698_vm1, %v699_v6  ;;  %v111_v7 = vld [vmem:[%s940_s3] sm:$0xff]  ;;  %v112_v8 = vld [vmem:[%s940_s3 + $0x8] sm:$0xff] }
   0x3   :  { %v113_v9 = vld [vmem:[%s940_s3 + $0x10] sm:$0xff]  ;;  %v618_v10 = vpack.c.bf16 %v24_v5, %v23_v3  ;;  %v622_v11 = vpack.c.bf16 %v112_v8, %v111_v7  ;;  %v114_v12 = vld [vmem:[%s940_s3 + $0x18] sm:$0xff]  ;;  %vm619_vm3 = vmpackc.low %vm36_vm0, %vm700_vm2 }
   0x4   :  { %616 = vmatpush3.bf16.msra.mxu0 %v615_v4  ;;  %v625_v13 = vpack.c.bf16 %v114_v12, %v113_v9  ;;  %v115_v14 = vld [vmem:[%s940_s3 + $0x20] sm:$0xff]  ;;  %v116_v15 = vld [vmem:[%s940_s3 + $0x28] sm:$0xff]  ;;  %v117_v18 = vld [vmem:[%s940_s3 + $0x30] sm:$0xff] }
   0x5   :  { %617 = vmatprep.subr.bf16.mxu0 %v697_v0  ;;  %623 = vmatpush3.bf16.msra.mxu1 %v622_v11  ;;  %v20_v16 = vld [vmem:[%s941_s0] sm:$0xff]  ;;  %v628_v17 = vpack.c.bf16 %v116_v15, %v115_v14  ;;  %v118_v19 = vld [vmem:[%s940_s3 + $0x38] sm:$0xff]  ;;  %v120_v22 = vld [vmem:[%s940_s3 + $0x48] sm:$0xff] }
   0x6   :  { %624 = vmatprep.subr.bf16.mxu1 %v697_v0  ;;  %v631_v20 = vpack.c.bf16 %v118_v19, %v117_v18  ;;  %v119_v21 = vld [vmem:[%s940_s3 + $0x40] sm:$0xff]  ;;  %v121_v24 = vld [vmem:[%s940_s3 + $0x50] sm:$0xff]  ;;  %v122_v25 = vld [vmem:[%s940_s3 + $0x58] sm:$0xff] }
   0x7   :  { %v634_v23 = vpack.c.bf16 %v120_v22, %v119_v21  ;;  %v637_v26 = vpack.c.bf16 %v122_v25, %v121_v24  ;;  %v123_v27 = vld [vmem:[%s940_s3 + $0x60] sm:$0xff]  ;;  %v124_v28 = vld [vmem:[%s940_s3 + $0x68] sm:$0xff]  ;;  %v125_v30 = vld [vmem:[%s940_s3 + $0x70] sm:$0xff] }
   0x8   :  { %620 = vmatpush3.bf16.msk.msra.mxu0 %vm619_vm3, %v618_v10  ;;  %v640_v29 = vpack.c.bf16 %v124_v28, %v123_v27  ;;  %v126_v31 = vld [vmem:[%s940_s3 + $0x78] sm:$0xff]  ;;  %v406_v33 = vld [vmem:[%s940_s3 + $0x80] sm:$0xff]  ;;  %v407_v34 = vld [vmem:[%s940_s3 + $0x88] sm:$0xff] }
   0x9   :  { %645 = vmatprep.subr.bf16.mxu0 %v697_v0  ;;  %626 = vmatpush3.bf16.msra.mxu1 %v625_v13  ;;  %v643_v32 = vpack.c.bf16 %v126_v31, %v125_v30  ;;  %v408_v35 = vld [vmem:[%s940_s3 + $0x90] sm:$0xff]  ;;  %v646_v36 = vpack.c.bf16 %v407_v34, %v406_v33  ;;  %v409_v37 = vld [vmem:[%s940_s3 + $0x98] sm:$0xff]  ;;  %v410_v39 = vld [vmem:[%s940_s3 + $0xa0] sm:$0xff] }
   0xa   :  { %627 = vmatprep.subr.bf16.mxu1 %v697_v0  ;;  %v649_v38 = vpack.c.bf16 %v409_v37, %v408_v35  ;;  %v411_v40 = vld [vmem:[%s940_s3 + $0xa8] sm:$0xff]  ;;  %v412_v42 = vld [vmem:[%s940_s3 + $0xb0] sm:$0xff]  ;;  %v413_v43 = vld [vmem:[%s940_s3 + $0xb8] sm:$0xff] }
   0xb   :  { %507 = vmatmul.mubr.msk.f32.vlgmr.msra.gmra.mrb[0].mxu0 %vm32_vm4, %v20_v16  ;;  %v652_v41 = vpack.c.bf16 %v411_v40, %v410_v39  ;;  %v655_v44 = vpack.c.bf16 %v413_v43, %v412_v42  ;;  %v414_v45 = vld [vmem:[%s940_s3 + $0xc0] sm:$0xff]  ;;  %v415_v46 = vld [vmem:[%s940_s3 + $0xc8] sm:$0xff]  ;;  %v416_v48 = vld [vmem:[%s940_s3 + $0xd0] sm:$0xff] }
   0xc   :  { %576 = vmatprep.mubr.msk.f32.mxu0 %vm698_vm1, %v699_v6  ;;  %647 = vmatpush3.bf16.msra.mxu0 %v646_v36  ;;  %v658_v47 = vpack.c.bf16 %v415_v46, %v414_v45  ;;  %v417_v49 = vld [vmem:[%s940_s3 + $0xd8] sm:$0xff]  ;;  %v418_v51 = vld [vmem:[%s940_s3 + $0xe0] sm:$0xff]  ;;  %v419_v52 = vld [vmem:[%s940_s3 + $0xe8] sm:$0xff] }
   0xd   :  { %629 = vmatpush3.bf16.msra.mxu1 %v628_v17  ;;  %648 = vmatprep.subr.bf16.mxu0 %v697_v0  ;;  %v661_v50 = vpack.c.bf16 %v417_v49, %v416_v48  ;;  %v664_v53 = vpack.c.bf16 %v419_v52, %v418_v51  ;;  %v402_v54 = vld [vmem:[%s942_s2] ss:$0 sm:$0xff]  ;;  %v420_v59 = vld [vmem:[%s940_s3 + $0xf0] sm:$0xff]  ;;  %v421_v60 = vld [vmem:[%s940_s3 + $0xf8] sm:$0xff] }
   0xe   :  { %630 = vmatprep.subr.bf16.mxu1 %v697_v0  ;;  %v667_v61 = vpack.c.bf16 %v421_v60, %v420_v59  ;;  %v424_v62 = vld [vmem:[%s940_s3 + $0x100] sm:$0xff]  ;;  %v425_v63 = vld [vmem:[%s940_s3 + $0x108] sm:$0xff]  ;;  %v426_v1 = vld [vmem:[%s940_s3 + $0x110] sm:$0xff] }
   0xf   :  { %v670_v2 = vpack.c.bf16 %v425_v63, %v424_v62  ;;  %v427_v3 = vld [vmem:[%s940_s3 + $0x118] sm:$0xff]  ;;  %v428_v5 = vld [vmem:[%s940_s3 + $0x120] sm:$0xff]  ;;  %v430_v8 = vld [vmem:[%s940_s3 + $0x130] sm:$0xff] }
  0x10   :  { %650 = vmatpush3.bf16.msra.mxu0 %v649_v38  ;;  %v673_v4 = vpack.c.bf16 %v427_v3, %v426_v1  ;;  %v431_v9 = vld [vmem:[%s940_s3 + $0x138] sm:$0xff]  ;;  %v432_v11 = vld [vmem:[%s940_s3 + $0x140] sm:$0xff]  ;;  %v433_v12 = vld [vmem:[%s940_s3 + $0x148] sm:$0xff] }
  0x11   :  { %632 = vmatpush3.bf16.msra.mxu1 %v631_v20  ;;  %651 = vmatprep.subr.bf16.mxu0 %v697_v0  ;;  %v679_v10 = vpack.c.bf16 %v431_v9, %v430_v8  ;;  %v682_v13 = vpack.c.bf16 %v433_v12, %v432_v11  ;;  %v434_v14 = vld [vmem:[%s940_s3 + $0x150] sm:$0xff]  ;;  %v435_v15 = vld [vmem:[%s940_s3 + $0x158] sm:$0xff]  ;;  %v436_v17 = vld [vmem:[%s940_s3 + $0x160] sm:$0xff] }
  0x12   :  { %633 = vmatprep.subr.bf16.mxu1 %v697_v0  ;;  %v685_v16 = vpack.c.bf16 %v435_v15, %v434_v14  ;;  %v437_v18 = vld [vmem:[%s940_s3 + $0x168] sm:$0xff]  ;;  %v405_v20 = vld [vmem:[%s943_s4] ss:$0 sm:$0xff]  ;;  %v438_v25 = vld [vmem:[%s940_s3 + $0x170] sm:$0xff] }
  0x13   :  { %v688_v19 = vpack.c.bf16 %v437_v18, %v436_v17 }
  0x14   :  { %653 = vmatpush3.bf16.msra.mxu0 %v652_v41 }
  0x15   :  { %635 = vmatpush3.bf16.msra.mxu1 %v634_v23  ;;  %654 = vmatprep.subr.bf16.mxu0 %v697_v0 }
  0x16   :  { %636 = vmatprep.subr.bf16.mxu1 %v697_v0 }
  0x18   :  { %656 = vmatpush3.bf16.msra.mxu0 %v655_v44 }
  0x19   :  { %638 = vmatpush3.bf16.msra.mxu1 %v637_v26  ;;  %657 = vmatprep.subr.bf16.mxu0 %v697_v0  ;;  %v439_v26 = vld [vmem:[%s940_s3 + $0x178] sm:$0xff] }
  0x1a   :  { %639 = vmatprep.subr.bf16.mxu1 %v697_v0  ;;  %v691_v27 = vpack.c.bf16 %v439_v26, %v438_v25 }
  0x1c   :  { %659 = vmatpush3.bf16.msra.mxu0 %v658_v47 }
  0x1d   :  { %641 = vmatpush3.bf16.msra.mxu1 %v640_v29  ;;  %660 = vmatprep.subr.bf16.mxu0 %v697_v0 }
  0x1e   :  { %642 = vmatprep.subr.bf16.mxu1 %v697_v0 }
  0x20   :  { %662 = vmatpush3.bf16.msra.mxu0 %v661_v50 }
  0x21   :  { %644 = vmatpush3.bf16.msra.mxu1 %v643_v32  ;;  %663 = vmatprep.subr.bf16.mxu0 %v697_v0  ;;  %v441_v32 = vld [vmem:[%s943_s4 + $0x2] ss:$0 sm:$0xff] }
  0x22   :  { %669 = vmatprep.subr.bf16.mxu1 %v697_v0 }
  0x24   :  { %665 = vmatpush3.bf16.msra.mxu0 %v664_v53 }
  0x25   :  { %666 = vmatprep.subr.bf16.mxu0 %v697_v0 }
  0x28   :  { %668 = vmatpush3.bf16.msra.mxu0 %v667_v61 }
  0xde   :  { %v106_v55 = vpop.f32.mrb[0].mxu0 }
  0xdf   :  { %v107_v56 = vadd.f32 %v402_v54, %v106_v55  ;;  %v508_v57 = vpop.f32.mrb[1].mxu0 }
  0xe1   :  { %v110_v58 = vmax.f32 %v107_v56, 0.0 }
  0xe3   :  { %542 = vmatmul.mubr.f32.vlgmr.msra.gmra.mrb[0].mxu1 %v110_v58 }
  0xe4   :  { %611 = vmatprep.mubr.msk.f32.mxu1 %vm698_vm1, %v699_v6  ;;  %671 = vmatpush3.bf16.msra.mxu1 %v670_v2  ;;  %v429_v6 = vld [vmem:[%s940_s3 + $0x128] sm:$0xff] }
  0xe5   :  { %672 = vmatprep.subr.bf16.mxu1 %v697_v0  ;;  %v676_v7 = vpack.c.bf16 %v429_v6, %v428_v5 }
  0xe8   :  { %674 = vmatpush3.bf16.msra.mxu1 %v673_v4 }
  0xe9   :  { %675 = vmatprep.subr.bf16.mxu1 %v697_v0 }
  0xec   :  { %677 = vmatpush3.bf16.msra.mxu1 %v676_v7 }
  0xed   :  { %678 = vmatprep.subr.bf16.mxu1 %v697_v0 }
  0xf0   :  { %680 = vmatpush3.bf16.msra.mxu1 %v679_v10 }
  0xf1   :  { %681 = vmatprep.subr.bf16.mxu1 %v697_v0 }
  0xf4   :  { %683 = vmatpush3.bf16.msra.mxu1 %v682_v13 }
  0xf5   :  { %684 = vmatprep.subr.bf16.mxu1 %v697_v0 }
  0xf8   :  { %686 = vmatpush3.bf16.msra.mxu1 %v685_v16 }
  0xf9   :  { %687 = vmatprep.subr.bf16.mxu1 %v697_v0 }
  0xfc   :  { %689 = vmatpush3.bf16.msra.mxu1 %v688_v19 }
  0xfd   :  { %690 = vmatprep.subr.bf16.mxu1 %v697_v0  ;;  %v423_v0 = vld [vmem:[%s943_s4 + $0x1] ss:$0 sm:$0xff] }
 0x100   :  { %692 = vmatpush3.bf16.msra.mxu1 %v691_v27 }
 0x1b6   :  { %v200_v21 = vpop.f32.mrb[0].mxu1 }
 0x1b7   :  { %v201_v22 = vadd.f32 %v405_v20, %v200_v21  ;;  %v543_v23 = vpop.f32.mrb[1].mxu1 }
 0x1b9   :  { %v204_v24 = vmax.f32 %v201_v22, 0.0 }
 0x1bb   :  { %577 = vmatmul.mubr.f32.vlgmr.msra.gmra.mrb[2].mxu0 %v204_v24 }
 0x28e   :  { %v296_v28 = vpop.f32.mrb[2].mxu0 }
 0x28f   :  { %v297_v29 = vadd.f32 %v423_v0, %v296_v28  ;;  %v578_v30 = vpop.f32.mrb[3].mxu0 }
 0x291   :  { %v300_v31 = vmax.f32 %v297_v29, 0.0 }
 0x293   :  { %612 = vmatmul.mubr.f32.vlgmr.msra.gmra.mrb[2].mxu1 %v300_v31 }
 0x366   :  { %v392_v33 = vpop.f32.mrb[2].mxu1 }
 0x367   :  { %v393_v34 = vadd.f32 %v441_v32, %v392_v33  ;;  %v613_v35 = vpop.f32.mrb[3].mxu1 }
 0x369   :  { %v396_v36 = vmax.f32 %v393_v34, 0.0 }
 0x36b   :  { %397 = vst [vmem:[%s944_s5] sm:$0xff] %v396_v36 }

</bundles_post_ra>
